<compile_context>
chip_gen: v7x
topology: tpu7x:2x2x1
jax: 0.10.0
libtpu: 0.0.40
codegen_flags: <defaults>
</compile_context>

<pallas_src>
import functools

import jax
import jax.numpy as jnp
from jax.experimental import pallas as pl
from jax.experimental.pallas import tpu as pltpu


def _glu_ffn_fused_kernel(x_ref, w12_ref, b12_ref, w3_ref, b3_ref, out_ref, *,
                          filter_size):
    x = x_ref[...]                                                        # (R, E)
    # Fused fc1/fc2 in-projection: (R, E) @ (E, 2F) + (1, 2F); F % 128 == 0 so the
    # split below is lane-tile aligned (no cross-lane copy).
    h = jnp.dot(x, w12_ref[...], preferred_element_type=jnp.float32) + b12_ref[...]
    h1 = h[:, :filter_size]                                               # fc1(x)
    h2 = h[:, filter_size:]                                               # fc2(x)
    g = h1 * jax.nn.sigmoid(h2)                                           # GLU gate (EUP)
    y = jnp.dot(g.astype(w3_ref.dtype), w3_ref[...],
                preferred_element_type=jnp.float32) + b3_ref[...]
    out_ref[...] = y.astype(out_ref.dtype)


def _glu_ffn_split_kernel(x_ref, w1_ref, b1_ref, w2_ref, b2_ref, w3_ref, b3_ref,
                          out_ref):
    x = x_ref[...]                                                        # (R, E)
    h1 = jnp.dot(x, w1_ref[...], preferred_element_type=jnp.float32) + b1_ref[...]
    h2 = jnp.dot(x, w2_ref[...], preferred_element_type=jnp.float32) + b2_ref[...]
    g = h1 * jax.nn.sigmoid(h2)                                           # GLU gate (EUP)
    y = jnp.dot(g.astype(w3_ref.dtype), w3_ref[...],
                preferred_element_type=jnp.float32) + b3_ref[...]
    out_ref[...] = y.astype(out_ref.dtype)


def _round_up(x, m):
    return (x + m - 1) // m * m


def positionwise_feed_forward(src, params):
    """src: (..., hidden_size). Returns the same shape. Inference semantics."""
    orig_shape = src.shape
    E = orig_shape[-1]
    F = params["w1"].shape[0]

    # Flatten leading dims into one row axis (free reshape — last dim untouched).
    x2d = src.reshape(-1, E)
    M = x2d.shape[0]

    # Row tile: large enough to amortize per-grid-step overhead, but keep >= 2 grid
    # steps when M allows so the parallel axis can span both TensorCores on v7x.
    if M >= 16:
        block_rows = min(512, _round_up(pl.cdiv(M, 2), 8))
    else:
        block_rows = _round_up(max(M, 1), 8)
    M_pad = _round_up(M, block_rows)
    if M_pad != M:
        x2d = jnp.pad(x2d, ((0, M_pad - M), (0, 0)))

    # PyTorch nn.Linear computes x @ W^T + b -> pre-transpose weights once (wrapper).
    w1_t = params["w1"].T                                                 # (E, F)
    w2_t = params["w2"].T                                                 # (E, F)
    w3_t = params["w3"].T                                                 # (F, E)
    b1 = params["b1"].reshape(1, F)
    b2 = params["b2"].reshape(1, F)
    b3 = params["b3"].reshape(1, E)

    const = lambda i: (0, 0)
    row_spec = pl.BlockSpec((block_rows, E), lambda i: (i, 0))

    if F % 128 == 0:
        # Fused fc1/fc2 path: single wide lane-dense projection, aligned split.
        w12_t = jnp.concatenate([w1_t, w2_t], axis=1)                     # (E, 2F)
        b12 = jnp.concatenate([b1, b2], axis=1)                           # (1, 2F)
        kernel = functools.partial(_glu_ffn_fused_kernel, filter_size=F)
        in_specs = [
            row_spec,                                    # activations (row-tiled)
            pl.BlockSpec((E, 2 * F), const),             # [W1^T | W2^T] (resident)
            pl.BlockSpec((1, 2 * F), const),             # [b1 | b2]
            pl.BlockSpec((F, E), const),                 # W3^T
            pl.BlockSpec((1, E), const),                 # b3
        ]
        operands = (x2d, w12_t, b12, w3_t, b3)
    else:
        # Unaligned F: keep fc1/fc2 separate to avoid a cross-lane slice copy.
        kernel = _glu_ffn_split_kernel
        in_specs = [
            row_spec,
            pl.BlockSpec((E, F), const),                 # W1^T (resident)
            pl.BlockSpec((1, F), const),                 # b1
            pl.BlockSpec((E, F), const),                 # W2^T (resident)
            pl.BlockSpec((1, F), const),                 # b2
            pl.BlockSpec((F, E), const),                 # W3^T (resident)
            pl.BlockSpec((1, E), const),                 # b3
        ]
        operands = (x2d, w1_t, b1, w2_t, b2, w3_t, b3)

    out = pl.pallas_call(
        kernel,
        out_shape=jax.ShapeDtypeStruct((M_pad, E), src.dtype),
        grid_spec=pltpu.PrefetchScalarGridSpec(
            num_scalar_prefetch=0,
            grid=(M_pad // block_rows,),
            in_specs=in_specs,
            out_specs=pl.BlockSpec((block_rows, E), lambda i: (i, 0)),
        ),
        compiler_params=pltpu.CompilerParams(
            dimension_semantics=("parallel",)),
    )(*operands)

    return out[:M].reshape(orig_shape)


def _reference(src, params):
    """Pure-JAX reference mirroring the PyTorch module in eval mode."""
    h1 = src @ params["w1"].T + params["b1"]
    h2 = src @ params["w2"].T + params["b2"]
    g = h1 * jax.nn.sigmoid(h2)
    return g @ params["w3"].T + params["b3"]


if __name__ == "__main__":
    hidden_size = 32
    filter_size = 64
    seq_len, batch = 8, 2     # src: (seq, batch, hidden) — seq-first transformer layout

    key = jax.random.PRNGKey(0)
    keys = jax.random.split(key, 8)
    scale = 0.1
    params = {
        "w1": scale * jax.random.normal(keys[0], (filter_size, hidden_size), jnp.float32),
        "b1": scale * jax.random.normal(keys[1], (filter_size,), jnp.float32),
        "w2": scale * jax.random.normal(keys[2], (filter_size, hidden_size), jnp.float32),
        "b2": scale * jax.random.normal(keys[3], (filter_size,), jnp.float32),
        "w3": scale * jax.random.normal(keys[4], (hidden_size, filter_size), jnp.float32),
        "b3": scale * jax.random.normal(keys[5], (hidden_size,), jnp.float32),
    }

    src = jax.random.normal(keys[6], (seq_len, batch, hidden_size), jnp.float32)

    out = positionwise_feed_forward(src, params)
    out = jax.block_until_ready(out)

    ref = _reference(src, params)
    assert out.shape == src.shape
    assert jnp.allclose(out, ref, atol=1e-4, rtol=1e-4), "mismatch vs pure-JAX reference"

    print("KERNEL_OK")
</pallas_src>

<mosaic_0001>
module attributes {stable_mosaic.version = 11 : i64} {
  func.func @_glu_ffn_split_kernel(%arg0: i32, %arg1: memref<8x32xf32, #tpu.memory_space<vmem>>, %arg2: memref<32x64xf32, #tpu.memory_space<vmem>>, %arg3: memref<1x64xf32, #tpu.memory_space<vmem>>, %arg4: memref<32x64xf32, #tpu.memory_space<vmem>>, %arg5: memref<1x64xf32, #tpu.memory_space<vmem>>, %arg6: memref<64x32xf32, #tpu.memory_space<vmem>>, %arg7: memref<1x32xf32, #tpu.memory_space<vmem>>, %arg8: memref<8x32xf32, #tpu.memory_space<vmem>>) attributes {dimension_semantics = [#tpu.dimension_semantics<parallel>], iteration_bounds = array<i64: 2>, scalar_prefetch = 0 : i64, scratch_operands = 0 : i64, tpu.core_type = #tpu.core_type<tc>, window_params = [{transform_indices = @transform_0, window_bounds = array<i64: 8, 32>}, {pipeline_mode = #tpu.pipeline_mode<synchronous>, transform_indices = @transform_1, window_bounds = array<i64: 32, 64>}, {pipeline_mode = #tpu.pipeline_mode<synchronous>, transform_indices = @transform_2, window_bounds = array<i64: 1, 64>}, {pipeline_mode = #tpu.pipeline_mode<synchronous>, transform_indices = @transform_3, window_bounds = array<i64: 32, 64>}, {pipeline_mode = #tpu.pipeline_mode<synchronous>, transform_indices = @transform_4, window_bounds = array<i64: 1, 64>}, {pipeline_mode = #tpu.pipeline_mode<synchronous>, transform_indices = @transform_5, window_bounds = array<i64: 64, 32>}, {pipeline_mode = #tpu.pipeline_mode<synchronous>, transform_indices = @transform_6, window_bounds = array<i64: 1, 32>}, {transform_indices = @transform_7, window_bounds = array<i64: 8, 32>}]} {
    %c0 = arith.constant 0 : index
    %c0_0 = arith.constant 0 : index
    %0 = vector.load %arg1[%c0, %c0_0] : memref<8x32xf32, #tpu.memory_space<vmem>>, vector<8x32xf32>
    %c0_1 = arith.constant 0 : index
    %c0_2 = arith.constant 0 : index
    %1 = vector.load %arg2[%c0_1, %c0_2] : memref<32x64xf32, #tpu.memory_space<vmem>>, vector<32x64xf32>
    %cst = arith.constant dense<0.000000e+00> : vector<8x64xf32>
    %2 = tpu.matmul %0, %1, %cst {dimension_numbers = #tpu.dot_dimension_numbers<[1], [0], [0], [1], [0, 0, 1, 1], [], []>} : vector<8x32xf32>, vector<32x64xf32>, vector<8x64xf32> -> vector<8x64xf32>
    %c0_3 = arith.constant 0 : index
    %c0_4 = arith.constant 0 : index
    %3 = vector.load %arg3[%c0_3, %c0_4] : memref<1x64xf32, #tpu.memory_space<vmem>>, vector<1x64xf32>
    %4 = vector.broadcast %3 : vector<1x64xf32> to vector<8x64xf32>
    %5 = arith.addf %2, %4 : vector<8x64xf32>
    %c0_5 = arith.constant 0 : index
    %c0_6 = arith.constant 0 : index
    %6 = vector.load %arg4[%c0_5, %c0_6] : memref<32x64xf32, #tpu.memory_space<vmem>>, vector<32x64xf32>
    %cst_7 = arith.constant dense<0.000000e+00> : vector<8x64xf32>
    %7 = tpu.matmul %0, %6, %cst_7 {dimension_numbers = #tpu.dot_dimension_numbers<[1], [0], [0], [1], [0, 0, 1, 1], [], []>} : vector<8x32xf32>, vector<32x64xf32>, vector<8x64xf32> -> vector<8x64xf32>
    %c0_8 = arith.constant 0 : index
    %c0_9 = arith.constant 0 : index
    %8 = vector.load %arg5[%c0_8, %c0_9] : memref<1x64xf32, #tpu.memory_space<vmem>>, vector<1x64xf32>
    %9 = vector.broadcast %8 : vector<1x64xf32> to vector<8x64xf32>
    %10 = arith.addf %7, %9 : vector<8x64xf32>
    %11 = arith.negf %10 : vector<8x64xf32>
    %12 = math.exp %11 : vector<8x64xf32>
    %cst_10 = arith.constant 1.000000e+00 : f32
    %13 = vector.broadcast %cst_10 : f32 to vector<8x64xf32>
    %14 = arith.addf %13, %12 : vector<8x64xf32>
    %15 = arith.divf %13, %14 : vector<8x64xf32>
    %16 = arith.mulf %5, %15 : vector<8x64xf32>
    %c0_11 = arith.constant 0 : index
    %c0_12 = arith.constant 0 : index
    %17 = vector.load %arg6[%c0_11, %c0_12] : memref<64x32xf32, #tpu.memory_space<vmem>>, vector<64x32xf32>
    %cst_13 = arith.constant dense<0.000000e+00> : vector<8x32xf32>
    %18 = tpu.matmul %16, %17, %cst_13 {dimension_numbers = #tpu.dot_dimension_numbers<[1], [0], [0], [1], [0, 0, 1, 1], [], []>} : vector<8x64xf32>, vector<64x32xf32>, vector<8x32xf32> -> vector<8x32xf32>
    %c0_14 = arith.constant 0 : index
    %c0_15 = arith.constant 0 : index
    %19 = vector.load %arg7[%c0_14, %c0_15] : memref<1x32xf32, #tpu.memory_space<vmem>>, vector<1x32xf32>
    %20 = vector.broadcast %19 : vector<1x32xf32> to vector<8x32xf32>
    %21 = arith.addf %18, %20 : vector<8x32xf32>
    %c0_16 = arith.constant 0 : index
    %c0_17 = arith.constant 0 : index
    %22 = vector.load %arg8[%c0_16, %c0_17] : memref<8x32xf32, #tpu.memory_space<vmem>>, vector<8x32xf32>
    tpu.vector_store %arg8[%c0_16, %c0_17], %21 {strides = array<i32>} : memref<8x32xf32, #tpu.memory_space<vmem>>, vector<8x32xf32>,
    return
  }
  func.func @transform_0(%arg0: i32) -> (i32, i32) {
    %c0_i32 = arith.constant 0 : i32
    %c0_i32_0 = arith.constant 0 : i32
    return %arg0, %c0_i32 : i32, i32
  }
  func.func @transform_1(%arg0: i32) -> (i32, i32) {
    %c0_i32 = arith.constant 0 : i32
    %c0_i32_0 = arith.constant 0 : i32
    %c0_i32_1 = arith.constant 0 : i32
    return %c0_i32, %c0_i32_0 : i32, i32
  }
  func.func @transform_2(%arg0: i32) -> (i32, i32) {
    %c0_i32 = arith.constant 0 : i32
    %c0_i32_0 = arith.constant 0 : i32
    %c0_i32_1 = arith.constant 0 : i32
    return %c0_i32, %c0_i32_0 : i32, i32
  }
  func.func @transform_3(%arg0: i32) -> (i32, i32) {
    %c0_i32 = arith.constant 0 : i32
    %c0_i32_0 = arith.constant 0 : i32
    %c0_i32_1 = arith.constant 0 : i32
    return %c0_i32, %c0_i32_0 : i32, i32
  }
  func.func @transform_4(%arg0: i32) -> (i32, i32) {
    %c0_i32 = arith.constant 0 : i32
    %c0_i32_0 = arith.constant 0 : i32
    %c0_i32_1 = arith.constant 0 : i32
    return %c0_i32, %c0_i32_0 : i32, i32
  }
  func.func @transform_5(%arg0: i32) -> (i32, i32) {
    %c0_i32 = arith.constant 0 : i32
    %c0_i32_0 = arith.constant 0 : i32
    %c0_i32_1 = arith.constant 0 : i32
    return %c0_i32, %c0_i32_0 : i32, i32
  }
  func.func @transform_6(%arg0: i32) -> (i32, i32) {
    %c0_i32 = arith.constant 0 : i32
    %c0_i32_0 = arith.constant 0 : i32
    %c0_i32_1 = arith.constant 0 : i32
    return %c0_i32, %c0_i32_0 : i32, i32
  }
  func.func @transform_7(%arg0: i32) -> (i32, i32) {
    %c0_i32 = arith.constant 0 : i32
    %c0_i32_0 = arith.constant 0 : i32
    return %arg0, %c0_i32 : i32, i32
  }
}

</mosaic_0001>

<bundles_post_ra>
// kernel: tpu_custom_call.1
= control target key start
LH: loop header
LB: loop body
LE: loop exit
PB: predicated region body
PF: predicated region fallthrough
CT: control target
= control target key end

     0   :  { %12 = vsyncpa [#allocation3], 0  ;;  %s1029_s0 = inlined_call_operand.vmem [shape: f32[16,32], index: 0, kind: input, shape index: {}]   ;;  %s1030_s1 = inlined_call_operand.vmem [shape: f32[32,64], index: 1, kind: input, shape index: {}]   ;;  %s1031_s2 = inlined_call_operand.vmem [shape: f32[1,64], index: 2, kind: input, shape index: {}]   ;;  %s1032_s3 = inlined_call_operand.vmem [shape: f32[32,64], index: 3, kind: input, shape index: {}]   ;;  %s1033_s4 = inlined_call_operand.vmem [shape: f32[1,64], index: 4, kind: input, shape index: {}]   ;;  %s1034_s5 = inlined_call_operand.vmem [shape: f32[64,32], index: 5, kind: input, shape index: {}]   ;;  %s1035_s6 = inlined_call_operand.vmem [shape: f32[1,32], index: 6, kind: input, shape index: {}]   ;;  %s1036_s7 = inlined_call_operand.hbm [shape: f32[16,32], index: 7, kind: output, shape index: {}]  }
   0x1   :  { %14 = vsyncpa [#allocation3 + $0x1], 0  ;;  %s866_s24 = smov 0   ;;  %s868_s25 = smov 0  }
   0x2   :  { %s870_s26 = smov 0   ;;  %s872_s27 = smov 0  }
   0x3 LB: > { %s887_s28 = sadd.s32 4294967295, %s820_s27   ;;  %s611_s29 = sadd.s32 4294967294, %s820_s27   ;;  %s820_s27 = sphi %s872_s27, %s1042_s27   ;;  %s816_s26 = sphi %s870_s26, %s1041_s26   ;;  %s812_s25 = sphi %s868_s25, %s1040_s25   ;;  %s808_s24 = sphi %s866_s24, %s1039_s24  }
   0x4   : > { %s891_s30 = sadd.s32 1, %s820_s27   ;;  %s179_s8 = sadd.s32 1, %s816_s26 }
   0x5   : > { %s176_s9 = ssub.s32 %s820_s27, %s891_s30  ;;  %p189_p0 = scmp.ne.s32.totalorder %s816_s26, %s812_s25 }
   0x6   : > { %p177_p1 = scmp.eq.s32.totalorder %s176_s9, 0  ;;  %p190_p2 = scmp.eq.s32.totalorder %s887_s28, 1 }
   0x7   : > { %p195_p3 = scmp.ne.s32.totalorder %s812_s25, %s808_s24  ;;  %p196_p4 = scmp.eq.s32.totalorder %s611_s29, 1 }
   0x8   : > { %s902_s10 = scalar_select %p177_p1, %s816_s26, %s179_s8  }
   0x9   : > { %p904_p5 = por %p190_p2, %p189_p0  ;;  %p908_p6 = por %p196_p4, %p195_p3 }
   0xa   : > { %p614_p7 = scmp.ge.s32.totalorder %s820_s27, 1  ;;  %p239_p8 = scmp.lt.s32.totalorder %s820_s27, 3 }
   0xc   : > { %p240_p9 = pnand %p614_p7, %p239_p8 }
   0xd   : > { %v275_v0 = vld [vmem:[%s1030_s1] sm:$0xff] (!%p240_p9)  ;;  %v276_v1 = vld [vmem:[%s1030_s1 + $0x8] sm:$0xff] (!%p240_p9)  ;;  %v277_v2 = vld [vmem:[%s1030_s1 + $0x10] sm:$0xff] (!%p240_p9)  ;;  %v822_v3 = vmov (!%p240_p9), 0.0|0.0   ;;  %vm823_vm0 = vmmov (!%p240_p9), 0   ;;  %v824_v6 = vmov (!%p240_p9), 0.0  }
   0xe   : > { %243 = sbr.rel (%p240_p9) target bundleno = 504 (0x1f8), region = 48  ;;  %688 = vmatprep.subr.bf16.mxu1 (!%p240_p9), %v822_v3  ;;  %v689_v4 = vpack.c.bf16 (!%p240_p9), %v276_v1, %v275_v0  ;;  %v278_v5 = vld [vmem:[%s1030_s1 + $0x18] sm:$0xff] (!%p240_p9)  ;;  %655 = vmatprep.mubr.msk.f32.mxu1 (!%p240_p9), %vm823_vm0, %v824_v6  ;;  %p270_p10 = scmp.lt.s32.totalorder (!%p240_p9), %s887_s28, 1  ;;  %v360_v8 = vld [vmem:[%s1032_s3] sm:$0xff] (!%p240_p9)  ;;  %v361_v9 = vld [vmem:[%s1032_s3 + $0x8] sm:$0xff] (!%p240_p9)  ;;  %vm286_vm1 = vcmask (!%p240_p9), 261120  }
   0xf   : > { %700 = vmatprep.subr.bf16.mxu0 (!%p240_p9), %v822_v3  ;;  %685 = vmatprep.mubr.msk.f32.mxu0 (!%p240_p9), %vm823_vm0, %v824_v6  ;;  %v692_v7 = vpack.c.bf16 (!%p240_p9), %v278_v5, %v277_v2  ;;  %v695_v11 = vpack.c.bf16 (!%p240_p9), %v361_v9, %v360_v8  ;;  %v362_v12 = vld [vmem:[%s1032_s3 + $0x10] sm:$0xff] (!%p240_p9)  ;;  %v363_v13 = vld [vmem:[%s1032_s3 + $0x18] sm:$0xff] (!%p240_p9)  ;;  %v448_v15 = vld [vmem:[%s1034_s5] sm:$0xff] (!%p240_p9)  ;;  %vm463_vm2 = vcmask (!%p240_p9), 523264   ;;  %s625_s16 = sshll.u32 (!%p240_p9), %s887_s28, 7 }
  0x10   : > { %690 = vmatpush3.bf16.msra.mxu1 (!%p240_p9), %v689_v4  ;;  %v698_v14 = vpack.c.bf16 (!%p240_p9), %v363_v13, %v362_v12  ;;  %v449_v16 = vld [vmem:[%s1034_s5 + $0x8] sm:$0xff] (!%p240_p9)  ;;  %v450_v18 = vld [vmem:[%s1034_s5 + $0x10] sm:$0xff] (!%p240_p9)  ;;  %v451_v19 = vld [vmem:[%s1034_s5 + $0x18] sm:$0xff] (!%p240_p9) }
  0x11   : > { %691 = vmatprep.subr.bf16.mxu1 (!%p240_p9), %v822_v3  ;;  %v701_v17 = vpack.c.bf16 (!%p240_p9), %v449_v16, %v448_v15  ;;  %v704_v20 = vpack.c.bf16 (!%p240_p9), %v451_v19, %v450_v18  ;;  %v452_v21 = vld [vmem:[%s1034_s5 + $0x20] sm:$0xff] (!%p240_p9)  ;;  %v453_v22 = vld [vmem:[%s1034_s5 + $0x28] sm:$0xff] (!%p240_p9)  ;;  %v454_v24 = vld [vmem:[%s1034_s5 + $0x30] sm:$0xff] (!%p240_p9) }
  0x12   : > { %v707_v23 = vpack.c.bf16 (!%p240_p9), %v453_v22, %v452_v21  ;;  %v455_v25 = vld [vmem:[%s1034_s5 + $0x38] sm:$0xff] (!%p240_p9)  ;;  %v619_v29 = vld [vmem:[%s1033_s4] ss:$0 sm:$0xff] (!%p240_p9) }
  0x13   : > { %702 = vmatpush3.bf16.msra.mxu0 (!%p240_p9), %v701_v17  ;;  %v710_v26 = vpack.c.bf16 (!%p240_p9), %v455_v25, %v454_v24  ;;  %v617_v36 = vld [vmem:[%s1031_s2] ss:$0 sm:$0xff] (!%p240_p9) }
  0x14   : > { %693 = vmatpush3.bf16.msra.mxu1 (!%p240_p9), %v692_v7  ;;  %703 = vmatprep.subr.bf16.mxu0 (!%p240_p9), %v822_v3  ;;  %v622_v40 = vld [vmem:[%s1035_s6] ss:$0 sm:$0xff] (!%p240_p9) }
  0x15   : > { %s271_s21 = scalar_select %p270_p10, %s887_s28, 1  ;;  %694 = vmatprep.subr.bf16.mxu1 %v822_v3 }
  0x16   : > { %s825_s28 = smov [#allocation2]  }
  0x17   : > { %s616_s9 = sshll.u32 %s271_s21, 3  ;;  %705 = vmatpush3.bf16.msra.mxu0 %v704_v20  ;;  %s986_s21 = scalar_lea.hbm %s1036_s7, %s625_s16 }
  0x18   : > { %s273_s15 = scalar_lea.vmem %s1029_s0, %s616_s9  ;;  %706 = vmatprep.subr.bf16.mxu0 %v822_v3  ;;  %s267_s9 = sand.u32 1, %s812_s25  }
  0x19   : > { %v274_v10 = vld [vmem:[%s273_s15] sm:$0xff]  ;;  %s615_s13 = sshll.u32 %s267_s9, 3  ;;  %s539_s22 = scalar_lea.sflag [#allocation3], %s267_s9 }
  0x1a   : > { %656 = vmatmul.mubr.msk.f32.vlgmr.msra.gmra.mrb[0].mxu1 %vm286_vm1, %v274_v10  ;;  %s269_s17 = scalar_lea.vmem [#allocation2], %s615_s13  ;;  %s762_s29 = sshll.u32 %s825_s28, 4  ;;  %s763_s29 = int_to_ptr.vmem [resolvable:$false] %s762_s29 }
  0x1b   : > { %696 = vmatpush3.bf16.msra.mxu1 %v695_v11  ;;  %666 = vmatprep.mubr.msk.f32.mxu1 %vm823_vm0, %v824_v6  ;;  %s552_s18 = sshll.u32 %s269_s17, 4  ;;  %s764_s8 = scalar_lea.vmem %s763_s29, 256  ;;  %s988_s18 = int_to_ptr.vmem [resolvable:$true] %s552_s18 }
  0x1c   : > { %697 = vmatprep.subr.bf16.mxu1 %v822_v3  ;;  %708 = vmatpush3.bf16.msra.mxu0 %v707_v23  ;;  %s758_s23 = scalar_lea.vmem %s988_s18, 128  ;;  %p765_p0 = scmp.lt.s32.totalorder %s988_s18, %s763_s29 }
  0x1d   : > { %709 = vmatprep.subr.bf16.mxu0 %v822_v3  ;;  %p759_p11 = scmp.ne.s32.totalorder %s988_s18, %s758_s23  ;;  %p766_p1 = scmp.lt.s32.totalorder %s764_s8, %s758_s23 }
  0x1f   : > { %699 = vmatpush3.bf16.msra.mxu1 %v698_v14  ;;  %p760_p12 = pnand %p759_p11, %p904_p5  ;;  %p767_p2 = por %p766_p1, %p765_p0 }
  0x20   : > { %711 = vmatpush3.bf16.msra.mxu0 %v710_v26 }
  0x21   : > { %p761_p13 = pneg %p760_p12 }
  0x22   : > { %667 = vmatmul.mubr.msk.f32.vlgmr.msra.gmra.mrb[2].mxu1 %vm286_vm1, %v274_v10 }
  0x23   : > { %p768_p3 = pnand %p767_p2, %p761_p13 }
  0xed   : > { %v356_v27 = vpop.f32.mrb[0].mxu1 }
  0xee   : > { %v657_v28 = vpop.f32.mrb[1].mxu1  ;;  %v357_v37 = vadd.f32 %v617_v36, %v356_v27 }
  0xf5   : > { %v437_v30 = vpop.f32.mrb[2].mxu1 }
  0xf6   : > { %v438_v31 = vadd.f32 %v619_v29, %v437_v30  ;;  %v668_v32 = vpop.f32.mrb[3].mxu1 }
  0xf8   : > { %v621_v33 = vmul.f32 -1.442695, %v438_v31 }
  0xfa   : > { %754 = vpow2.f32 %v621_v33 }
 0x104   : > { %v755_v34 = vpop.eup %754 }
 0x105   : > { %v444_v35 = vadd.f32 1.0, %v755_v34 }
 0x107   : > { %756 = vrcp.f32 %v444_v35 }
 0x111   : > { %v757_v38 = vpop.eup %756 }
 0x112   : > { %v447_v39 = vmul.f32 %v757_v38, %v357_v37 }
 0x114   : > { %686 = vmatmul.mubr.msk.f32.vlgmr.msra.gmra.mrb[0].mxu0 %vm463_vm2, %v447_v39 }
 0x1e7   : > { %v533_v41 = vpop.f32.mrb[0].mxu0 }
 0x1e8   : > { %v534_v42 = vadd.f32 %v622_v40, %v533_v41  ;;  %v687_v43 = vpop.f32.mrb[1].mxu0 }
 0x1ea   : > { %537 = vst.msk [vmem:[%s269_s17] sm:$0xff] %vm286_vm1, %v534_v42 }
 0x1eb   : > { %771 = shalt.err (!%p768_p3)
}
 0x1ec   : > { %s772_s9 = scalar_lea.hbm %s986_s21, 128  ;;  %s776_s15 = scalar_lea.hbm %s1036_s7, 256 }
 0x1ed   : > { %p773_p4 = scmp.ne.s32.totalorder %s986_s21, %s772_s9  ;;  %p777_p9 = scmp.lt.u32.totalorder %s986_s21, %s1036_s7 }
 0x1ee   : > { %p778_p10 = scmp.lt.u32.totalorder %s776_s15, %s772_s9  ;;  %p780_p12 = scmp.lt.u32.totalorder %s772_s9, %s986_s21 }
 0x1ef   : > { %p774_p7 = pnand %p773_p4, %p904_p5 }
 0x1f0   : > { %p779_p11 = por %p778_p10, %p777_p9 }
 0x1f1   : > { %p775_p8 = pneg %p774_p7 }
 0x1f2   : > { %p781_p13 = por %p780_p12, %p779_p11 }
 0x1f4   : > { %p782_p0 = pnand %p781_p13, %p775_p8 }
 0x1f6   : > { %785 = shalt.err (!%p782_p0)
}
 0x1f7   : > { %712 = dma.vmem_to_hbm [thread:$0]  (%p904_p5), %s988_s18, 128, %s986_s21, %s539_s22  }
 0x1f8 PF: > { %p718_p1 = scmp.ge.s32.totalorder %s820_s27, 2  ;;  %s564_s19 = sand.u32 1, %s808_s24  }
 0x1f9   : > { %s565_s20 = scalar_lea.sflag [#allocation3], %s564_s19 }
 0x1fa   : > { %p715_p2 = pnand %p718_p1, %p908_p6 }
 0x1fc   : > { %803 = dma.done.wait (!%p715_p2), %s565_s20, 128  }
 0x1fd   : > { %805 = vsyncadd (!%p715_p2), %s565_s20, 4294967168  ;;  %p17_p3 = scmp.ge.s32.totalorder %s891_s30, 4   ;;  %s1039_s24 = smov %s812_s25 }
 0x1fe   : > { %s1040_s25 = smov %s816_s26  ;;  %s1041_s26 = smov %s902_s10 }
 0x1ff   : > { %s1042_s27 = smov %s891_s30  ;;  %19 = sbr.rel (!%p17_p3) target bundleno = 3 (0x3), region = 83 }
 0x206   :  { %570 = vsyncpa [#allocation3], 1 }
 0x207   :  { %572 = vsyncpa [#allocation3 + $0x1], 1 }

</bundles_post_ra>
